<compile_context>
chip_gen: v5e
topology: v5e:2x2
jax: 0.10.0
libtpu: 0.0.40
codegen_flags: <defaults>
</compile_context>

<pallas_src>
import jax
import jax.numpy as jnp
from jax.experimental import pallas as pl
from jax.experimental.pallas import tpu as pltpu


def _round_up(n, m):
    return ((n + m - 1) // m) * m


def _mlp_kernel(x_ref, w1_ref, b1_ref, w2_ref, b2_ref, w3_ref, b3_ref, o_ref):
    # x block arrives in native f32; cast to bf16 in-register (free VPU op)
    # right before the MXU pass -> no extra HBM copy of x.
    x = x_ref[...].astype(jnp.bfloat16)

    # Layer 1: (TB, D) @ (D, 64), bf16 MXU, f32 accumulate.
    h1 = jnp.dot(x, w1_ref[...], preferred_element_type=jnp.float32) + b1_ref[...]
    h1 = jnp.maximum(h1, 0.0).astype(jnp.bfloat16)

    # Layer 2: (TB, 64) @ (64, 32), bf16 MXU, f32 accumulate.
    h2 = jnp.dot(h1, w2_ref[...], preferred_element_type=jnp.float32) + b2_ref[...]
    h2 = jnp.maximum(h2, 0.0)

    # Layer 3 as a transposed contraction: (1, 32) . (TB, 32)^T -> (1, TB).
    # This lands the per-row logits lane-dense, so the sigmoid (EUP) and the
    # store run at full lane utilization instead of a (TB, 1) masked column.
    logits = jax.lax.dot_general(
        w3_ref[...], h2,
        dimension_numbers=(((1,), (1,)), ((), ())),
        preferred_element_type=jnp.float32,
    ) + b3_ref[...]                      # (1, TB) + (1, 1)
    o_ref[...] = jax.nn.sigmoid(logits).astype(o_ref.dtype)


def _vmem_capacity_bytes():
    try:
        return int(pltpu.get_tpu_info().vmem_capacity_bytes)
    except Exception:
        return 64 * 1024 * 1024          # conservative: v7x per-TensorCore VMEM


def _pick_tile_batch(batch, input_size, vmem_cap):
    """Derive the batch tile from a VMEM budget (generation-aware)."""
    d_lanes = _round_up(max(input_size, 1), 128)
    # Per-row VMEM bytes: f32 x block (double-buffered), its bf16 cast,
    # h1 (f32 + bf16, 64 lanes pad to 128), h2 (f32), the transposed h2
    # operand of the final dot, and the (1, TB) output block (pads to 8
    # sublanes, double-buffered).
    per_row = (
        2 * d_lanes * 4
        + d_lanes * 2
        + 128 * (4 + 2)
        + 128 * 4
        + 128 * 4
        + 8 * 4 * 2
    )
    budget = int(vmem_cap * 0.40)        # leave headroom for compiler scratch
    tb = max(1024, (budget // per_row) // 128 * 128)
    tb = min(tb, 32768)
    # Keep grid length >= 2 when the batch allows it, so the "parallel" batch
    # axis can shard across both TensorCores on v7x.
    tb = min(tb, max(128, _round_up(-(-batch // 2), 128)))
    if tb >= batch:                      # tiny batch: one full-array block
        tb = batch
    return tb


def preference_model_forward(x, params, *, tile_batch=None):
    """Fused forward pass of PreferenceModel.

    x:      (batch, input_size) float32
    params: dict with w1 (input_size,64), b1 (1,64), w2 (64,32), b2 (1,32),
            w3 (32,1), b3 (1,1)
    returns (batch, 1) float32 in [0, 1]
    """
    batch, input_size = x.shape
    vmem_cap = _vmem_capacity_bytes()
    TB = tile_batch if tile_batch is not None else _pick_tile_batch(
        batch, input_size, vmem_cap)
    num_tiles = -(-batch // TB)

    # bf16 weights for the two MXU layers; f32 biases / final layer.
    w1 = params["w1"].astype(jnp.bfloat16)                     # (D, 64)
    b1 = params["b1"].reshape(1, 64).astype(jnp.float32)
    w2 = params["w2"].astype(jnp.bfloat16)                     # (64, 32)
    b2 = params["b2"].reshape(1, 32).astype(jnp.float32)
    w3 = params["w3"].reshape(1, 32).astype(jnp.float32)       # row vector
    b3 = params["b3"].reshape(1, 1).astype(jnp.float32)

    def resident(a):
        return pl.BlockSpec(a.shape, lambda i, _nd=a.ndim: (0,) * _nd)

    flops = 2 * batch * (input_size * 64 + 64 * 32 + 32)
    bytes_accessed = (
        batch * input_size * 4          # f32 x read (no wrapper-side copy)
        + batch * 4                     # f32 output write
        + input_size * 64 * 2           # bf16 w1
        + 64 * 32 * 2                   # bf16 w2
        + (64 + 32 + 32 + 1) * 4        # f32 biases + w3
    )

    out = pl.pallas_call(
        _mlp_kernel,
        out_shape=jax.ShapeDtypeStruct((num_tiles, TB), jnp.float32),
        grid=(num_tiles,),
        in_specs=[
            pl.BlockSpec((TB, input_size), lambda i: (i, 0)),  # x: streamed
            resident(w1), resident(b1),
            resident(w2), resident(b2),
            resident(w3), resident(b3),
        ],
        out_specs=pl.BlockSpec((1, TB), lambda i: (i, 0)),     # lane-dense slab
        compiler_params=pltpu.CompilerParams(
            dimension_semantics=("parallel",),
            vmem_limit_bytes=min(vmem_cap * 3 // 4, 112 * 1024 * 1024),
        ),
        cost_estimate=pl.CostEstimate(
            flops=flops,
            transcendentals=batch,
            bytes_accessed=bytes_accessed,
        ),
    )(x, w1, b1, w2, b2, w3, b3)

    # (num_tiles, TB) row-major == batch order; drop ragged-tile garbage rows.
    return out.reshape(num_tiles * TB)[:batch].reshape(batch, 1)


def init_params(key, input_size):
    """Deterministic init matching PyTorch Linear shapes (stored transposed)."""
    k1, k2, k3, k4, k5, k6 = jax.random.split(key, 6)

    def uniform(k, shape, fan_in):
        bound = 1.0 / jnp.sqrt(fan_in)
        return jax.random.uniform(k, shape, jnp.float32, -bound, bound)

    return {
        "w1": uniform(k1, (input_size, 64), input_size),
        "b1": uniform(k2, (1, 64), input_size),
        "w2": uniform(k3, (64, 32), 64),
        "b2": uniform(k4, (1, 32), 64),
        "w3": uniform(k5, (32, 1), 32),
        "b3": uniform(k6, (1, 1), 32),
    }


def _reference_forward_mixed(x, p):
    """Reference mirroring the kernel's bf16 layer-1/2 casts."""
    h1 = jnp.dot(x.astype(jnp.bfloat16), p["w1"].astype(jnp.bfloat16),
                 preferred_element_type=jnp.float32) + p["b1"]
    h1 = jnp.maximum(h1, 0.0).astype(jnp.bfloat16)
    h2 = jnp.dot(h1, p["w2"].astype(jnp.bfloat16),
                 preferred_element_type=jnp.float32) + p["b2"]
    h2 = jnp.maximum(h2, 0.0)
    return jax.nn.sigmoid(h2 @ p["w3"] + p["b3"])


def _reference_forward_f32(x, p):
    h1 = jax.nn.relu(x @ p["w1"] + p["b1"])
    h2 = jax.nn.relu(h1 @ p["w2"] + p["b2"])
    return jax.nn.sigmoid(h2 @ p["w3"] + p["b3"])


if __name__ == "__main__":
    key = jax.random.PRNGKey(0)
    k_param, k_x, k_x2 = jax.random.split(key, 3)

    input_size = 32
    params = init_params(k_param, input_size)

    # Small case: batch not a multiple of 8/128 -> single full-array block.
    batch = 20
    x = jax.random.normal(k_x, (batch, input_size), jnp.float32)
    out = jax.block_until_ready(preference_model_forward(x, params))
    assert out.shape == (batch, 1)

    ref_mixed = _reference_forward_mixed(x, params)
    assert jnp.allclose(out, ref_mixed, atol=2e-3), \
        float(jnp.max(jnp.abs(out - ref_mixed)))
    ref_f32 = _reference_forward_f32(x, params)
    assert jnp.allclose(out, ref_f32, atol=5e-2), \
        float(jnp.max(jnp.abs(out - ref_f32)))

    # Multi-tile case with a ragged last tile (exercises partial-block path).
    batch2 = 300
    x2 = jax.random.normal(k_x2, (batch2, input_size), jnp.float32)
    out2 = jax.block_until_ready(preference_model_forward(x2, params))
    assert out2.shape == (batch2, 1)
    ref2 = _reference_forward_mixed(x2, params)
    assert jnp.allclose(out2, ref2, atol=2e-3), \
        float(jnp.max(jnp.abs(out2 - ref2)))

    print("KERNEL_OK")
</pallas_src>

<mosaic_0001>
module attributes {stable_mosaic.version = 11 : i64} {
  func.func @_mlp_kernel(%arg0: i32, %arg1: memref<20x32xf32, #tpu.memory_space<vmem>>, %arg2: memref<32x64xbf16, #tpu.memory_space<vmem>>, %arg3: memref<1x64xf32, #tpu.memory_space<vmem>>, %arg4: memref<64x32xbf16, #tpu.memory_space<vmem>>, %arg5: memref<1x32xf32, #tpu.memory_space<vmem>>, %arg6: memref<1x32xf32, #tpu.memory_space<vmem>>, %arg7: memref<1x1xf32, #tpu.memory_space<vmem>>, %arg8: memref<1x20xf32, #tpu.memory_space<vmem>>) attributes {dimension_semantics = [#tpu.dimension_semantics<parallel>], iteration_bounds = array<i64: 1>, scalar_prefetch = 0 : i64, scratch_operands = 0 : i64, tpu.core_type = #tpu.core_type<tc>, window_params = [{transform_indices = @transform_0, window_bounds = array<i64: 20, 32>}, {pipeline_mode = #tpu.pipeline_mode<synchronous>, transform_indices = @transform_1, window_bounds = array<i64: 32, 64>}, {pipeline_mode = #tpu.pipeline_mode<synchronous>, transform_indices = @transform_2, window_bounds = array<i64: 1, 64>}, {pipeline_mode = #tpu.pipeline_mode<synchronous>, transform_indices = @transform_3, window_bounds = array<i64: 64, 32>}, {pipeline_mode = #tpu.pipeline_mode<synchronous>, transform_indices = @transform_4, window_bounds = array<i64: 1, 32>}, {pipeline_mode = #tpu.pipeline_mode<synchronous>, transform_indices = @transform_5, window_bounds = array<i64: 1, 32>}, {pipeline_mode = #tpu.pipeline_mode<synchronous>, transform_indices = @transform_6, window_bounds = array<i64: 1, 1>}, {transform_indices = @transform_7, window_bounds = array<i64: 1, 20>}]} {
    %c0 = arith.constant 0 : index
    %c0_0 = arith.constant 0 : index
    %0 = vector.load %arg1[%c0, %c0_0] : memref<20x32xf32, #tpu.memory_space<vmem>>, vector<20x32xf32>
    %1 = arith.truncf %0 : vector<20x32xf32> to vector<20x32xbf16>
    %c0_1 = arith.constant 0 : index
    %c0_2 = arith.constant 0 : index
    %2 = vector.load %arg2[%c0_1, %c0_2] : memref<32x64xbf16, #tpu.memory_space<vmem>>, vector<32x64xbf16>
    %cst = arith.constant dense<0.000000e+00> : vector<20x64xf32>
    %3 = tpu.matmul %1, %2, %cst {dimension_numbers = #tpu.dot_dimension_numbers<[1], [0], [0], [1], [0, 0, 1, 1], [], []>} : vector<20x32xbf16>, vector<32x64xbf16>, vector<20x64xf32> -> vector<20x64xf32>
    %c0_3 = arith.constant 0 : index
    %c0_4 = arith.constant 0 : index
    %4 = vector.load %arg3[%c0_3, %c0_4] : memref<1x64xf32, #tpu.memory_space<vmem>>, vector<1x64xf32>
    %5 = vector.broadcast %4 : vector<1x64xf32> to vector<20x64xf32>
    %6 = arith.addf %3, %5 : vector<20x64xf32>
    %cst_5 = arith.constant 0.000000e+00 : f32
    %7 = vector.broadcast %cst_5 : f32 to vector<20x64xf32>
    %8 = arith.maximumf %6, %7 : vector<20x64xf32>
    %9 = arith.truncf %8 : vector<20x64xf32> to vector<20x64xbf16>
    %c0_6 = arith.constant 0 : index
    %c0_7 = arith.constant 0 : index
    %10 = vector.load %arg4[%c0_6, %c0_7] : memref<64x32xbf16, #tpu.memory_space<vmem>>, vector<64x32xbf16>
    %cst_8 = arith.constant dense<0.000000e+00> : vector<20x32xf32>
    %11 = tpu.matmul %9, %10, %cst_8 {dimension_numbers = #tpu.dot_dimension_numbers<[1], [0], [0], [1], [0, 0, 1, 1], [], []>} : vector<20x64xbf16>, vector<64x32xbf16>, vector<20x32xf32> -> vector<20x32xf32>
    %c0_9 = arith.constant 0 : index
    %c0_10 = arith.constant 0 : index
    %12 = vector.load %arg5[%c0_9, %c0_10] : memref<1x32xf32, #tpu.memory_space<vmem>>, vector<1x32xf32>
    %13 = vector.broadcast %12 : vector<1x32xf32> to vector<20x32xf32>
    %14 = arith.addf %11, %13 : vector<20x32xf32>
    %cst_11 = arith.constant 0.000000e+00 : f32
    %15 = vector.broadcast %cst_11 : f32 to vector<20x32xf32>
    %16 = arith.maximumf %14, %15 : vector<20x32xf32>
    %c0_12 = arith.constant 0 : index
    %c0_13 = arith.constant 0 : index
    %17 = vector.load %arg6[%c0_12, %c0_13] : memref<1x32xf32, #tpu.memory_space<vmem>>, vector<1x32xf32>
    %cst_14 = arith.constant dense<0.000000e+00> : vector<1x20xf32>
    %18 = tpu.matmul %17, %16, %cst_14 {dimension_numbers = #tpu.dot_dimension_numbers<[1], [1], [0], [0], [0, 0, 1, 0], [], []>} : vector<1x32xf32>, vector<20x32xf32>, vector<1x20xf32> -> vector<1x20xf32>
    %c0_15 = arith.constant 0 : index
    %c0_16 = arith.constant 0 : index
    %19 = vector.load %arg7[%c0_15, %c0_16] : memref<1x1xf32, #tpu.memory_space<vmem>>, vector<1x1xf32>
    %20 = vector.broadcast %19 : vector<1x1xf32> to vector<1x20xf32>
    %21 = arith.addf %18, %20 : vector<1x20xf32>
    %22 = arith.negf %21 : vector<1x20xf32>
    %23 = math.exp %22 : vector<1x20xf32>
    %cst_17 = arith.constant 1.000000e+00 : f32
    %24 = vector.broadcast %cst_17 : f32 to vector<1x20xf32>
    %25 = arith.addf %24, %23 : vector<1x20xf32>
    %26 = arith.divf %24, %25 : vector<1x20xf32>
    %c0_18 = arith.constant 0 : index
    %c0_19 = arith.constant 0 : index
    %27 = vector.load %arg8[%c0_18, %c0_19] : memref<1x20xf32, #tpu.memory_space<vmem>>, vector<1x20xf32>
    tpu.vector_store %arg8[%c0_18, %c0_19], %26 {strides = array<i32>} : memref<1x20xf32, #tpu.memory_space<vmem>>, vector<1x20xf32>,
    return
  }
  func.func @transform_0(%arg0: i32) -> (i32, i32) {
    %c0_i32 = arith.constant 0 : i32
    %c0_i32_0 = arith.constant 0 : i32
    return %arg0, %c0_i32 : i32, i32
  }
  func.func @transform_1(%arg0: i32) -> (i32, i32) {
    %c0_i32 = arith.constant 0 : i32
    %c0_i32_0 = arith.constant 0 : i32
    %c0_i32_1 = arith.constant 0 : i32
    return %c0_i32, %c0_i32_0 : i32, i32
  }
  func.func @transform_2(%arg0: i32) -> (i32, i32) {
    %c0_i32 = arith.constant 0 : i32
    %c0_i32_0 = arith.constant 0 : i32
    %c0_i32_1 = arith.constant 0 : i32
    return %c0_i32, %c0_i32_0 : i32, i32
  }
  func.func @transform_3(%arg0: i32) -> (i32, i32) {
    %c0_i32 = arith.constant 0 : i32
    %c0_i32_0 = arith.constant 0 : i32
    %c0_i32_1 = arith.constant 0 : i32
    return %c0_i32, %c0_i32_0 : i32, i32
  }
  func.func @transform_4(%arg0: i32) -> (i32, i32) {
    %c0_i32 = arith.constant 0 : i32
    %c0_i32_0 = arith.constant 0 : i32
    %c0_i32_1 = arith.constant 0 : i32
    return %c0_i32, %c0_i32_0 : i32, i32
  }
  func.func @transform_5(%arg0: i32) -> (i32, i32) {
    %c0_i32 = arith.constant 0 : i32
    %c0_i32_0 = arith.constant 0 : i32
    %c0_i32_1 = arith.constant 0 : i32
    return %c0_i32, %c0_i32_0 : i32, i32
  }
  func.func @transform_6(%arg0: i32) -> (i32, i32) {
    %c0_i32 = arith.constant 0 : i32
    %c0_i32_0 = arith.constant 0 : i32
    %c0_i32_1 = arith.constant 0 : i32
    return %c0_i32, %c0_i32_0 : i32, i32
  }
  func.func @transform_7(%arg0: i32) -> (i32, i32) {
    %c0_i32 = arith.constant 0 : i32
    %c0_i32_0 = arith.constant 0 : i32
    return %arg0, %c0_i32 : i32, i32
  }
}

</mosaic_0001>

<bundles_post_ra>
// kernel: tpu_custom_call.1
= control target key start
LH: loop header
LB: loop body
LE: loop exit
PB: predicated region body
PF: predicated region fallthrough
CT: control target
= control target key end

     0   :  { %s396_s0 = inlined_call_operand.vmem [shape: f32[20,32], index: 0, kind: input, shape index: {}]   ;;  %s397_s1 = inlined_call_operand.vmem [shape: bf16[32,64], index: 1, kind: input, shape index: {}]   ;;  %s398_s2 = inlined_call_operand.vmem [shape: f32[1,64], index: 2, kind: input, shape index: {}]   ;;  %s399_s3 = inlined_call_operand.vmem [shape: bf16[64,32], index: 3, kind: input, shape index: {}]   ;;  %s400_s4 = inlined_call_operand.vmem [shape: f32[1,32], index: 4, kind: input, shape index: {}]   ;;  %s401_s5 = inlined_call_operand.vmem [shape: f32[1,32], index: 5, kind: input, shape index: {}]   ;;  %s402_s6 = inlined_call_operand.<no memory space> [shape: f32[1,1], index: 6, kind: input, shape index: {}]   ;;  %s403_s7 = inlined_call_operand.hbm [shape: f32[1,20], index: 7, kind: output, shape index: {}]  }
   0x1   :  { %v12_v0 = vstv %s402_s6 }
   0x2   :  { %13 = vst [vmem:[#allocation2] sm:$0x1] %v12_v0 }
   0x3   :  { %v260_v1 = vld [vmem:[%s397_s1 + $0x8] sm:$0xff]  ;;  %v259_v2 = vld [vmem:[%s397_s1] sm:$0xff]  ;;  %v264_v5 = vld [vmem:[%s399_s3 + $0x18] sm:$0xff] }
   0x4   :  { %v30_v3 = vld [vmem:[%s396_s0] sm:$0xff]  ;;  %v31_v4 = vld [vmem:[%s396_s0 + $0x8] sm:$0xff]  ;;  %68 = vmatpush.bf16.msra.mxu0 %v260_v1  ;;  %265 = vmatpush.bf16.msra.mxu2 %v260_v1  ;;  %v32_v6 = vld [vmem:[%s396_s0 + $0x10] sm:$0xf] }
   0x5   :  { %267 = vmatpush.bf16.msra.mxu3 %v264_v5  ;;  %132 = vmatpush.bf16.msra.mxu1 %v264_v5 }
   0x6   :  { %14 = vsyncpa [#allocation4], 0  ;;  %v33_v7 = vpack.c.bf16 %v31_v4, %v30_v3  ;;  %v34_v8 = vpack.c.bf16 %v32_v6, %v32_v6  ;;  %vm55_vm0 = vcmask 261120   ;;  %v263_v9 = vld [vmem:[%s399_s3 + $0x10] sm:$0xff]  ;;  %v262_v10 = vld [vmem:[%s399_s3 + $0x8] sm:$0xff]  ;;  %vm121_vm1 = vcmask 523264  }
   0x7   :  { %v261_v11 = vld [vmem:[%s399_s3] sm:$0xff]  ;;  %v306_v26 = vmov 0   ;;  %s217_s24 = sshll.u32 %s403_s7, 4  ;;  %vm208_vm5 = vcmask 155648   ;;  %s218_s24 = int_to_ptr.hbm [resolvable:$true] %s217_s24 }
   0x8   :  { %69 = vmatpush.bf16.msra.mxu0 %v259_v2  ;;  %266 = vmatpush.bf16.msra.mxu2 %v259_v2  ;;  %v274_v13 = vld [vmem:[%s398_s2] ss:$0 sm:$0xff] }
   0x9   :  { %268 = vmatpush.bf16.msra.mxu3 %v263_v9  ;;  %133 = vmatpush.bf16.msra.mxu1 %v263_v9  ;;  %v150_v25 = vld [vmem:[#allocation2] sm:$0x1] }
   0xa   :  { %273 = vset.pattern.permute.xlu0 %v306_v26  ;;  %v275_v28 = vld [vmem:[%s400_s4] ss:$0 sm:$0xff]  ;;  %s307_s4 = smov [#allocation3]  }
   0xb   :  { %234 = vmatmul.msk.bf16.vlgmr.msra.gmra.mxu0 %vm55_vm0, %v33_v7  ;;  %235 = vmatmul.msk.bf16.vlgmr.msra.gmra.mxu2 %vm55_vm0, %v34_v8  ;;  %v149_v38 = vld [vmem:[%s401_s5] sm:$0x1]  ;;  %s215_s5 = sshll.u32 %s307_s4, 4  ;;  %s216_s5 = int_to_ptr.vmem [resolvable:$true] %s215_s5 }
   0xc   :  { %153 = vperm.xlu0 %273, %v150_v25  }
   0xd   :  { %269 = vmatpush.bf16.msra.mxu3 %v262_v10  ;;  %134 = vmatpush.bf16.msra.mxu1 %v262_v10 }
  0x11   :  { %270 = vmatpush.bf16.msra.mxu3 %v261_v11  ;;  %135 = vmatpush.bf16.msra.mxu1 %v261_v11 }
  0x7e   :  { %v154_v39 = vpop.permute.xlu0 %153 }
  0x7f   :  { %v156_v40 = vperm.slane %v154_v39, 0 }
  0x88   :  { %v71_v12 = vpop.f32.mrf.mxu0 }
  0x89   :  { %v72_v15 = vadd.f32 %v274_v13, %v71_v12 }
  0x8b   :  { %v80_v20 = vmax.f32 %v72_v15, 0.0 }
  0x8e   :  { %v76_v14 = vpop.f32.mrf.mxu2 }
  0x8f   :  { %v77_v16 = vadd.f32 %v274_v13, %v76_v14 }
  0x90   :  { %v73_v17 = vpop.f32.mrf.mxu0 }
  0x91   :  { %v82_v18 = vmax.f32 %v77_v16, 0.0  ;;  %v74_v19 = vadd.f32 %v274_v13, %v73_v17 }
  0x93   :  { %v84_v21 = vpack.c.bf16 %v82_v18, %v82_v18  ;;  %v81_v22 = vmax.f32 %v74_v19, 0.0 }
  0x95   :  { %v83_v23 = vpack.c.bf16 %v81_v22, %v80_v20  ;;  %253 = vmatmul.msk.bf16.vlgmr.msra.gmra.mxu3 %vm121_vm1, %v84_v21 }
  0x96   :  { %v78_v24 = vpop.f32.mrf.mxu2 }
  0x97   :  { %252 = vmatmul.msk.bf16.vlgmr.msra.gmra.mxu1 %vm121_vm1, %v83_v23 }
 0x114   :  { %v137_v27 = vpop.f32.mrf.mxu1 }
 0x115   :  { %v138_v34 = vadd.f32 %v275_v28, %v137_v27 }
 0x117   :  { %v146_v37 = vmax.f32 %v138_v34, 0.0 }
 0x118   :  { %v142_v29 = vpop.f32.mrf.mxu3 }
 0x119   :  { %v143_v30 = vadd.f32 %v275_v28, %v142_v29 }
 0x11b   :  { %v148_v31 = vmax.f32 %v143_v30, 0.0 }
 0x11c   :  { %v139_v32 = vpop.f32.mrf.mxu1 }
 0x11d   :  { %v140_v33 = vadd.f32 %v275_v28, %v139_v32  ;;  %254 = vmatpush.xpose.msk.msrb.mxu2 %vm55_vm0, %v148_v31 }
 0x11f   :  { %v147_v35 = vmax.f32 %v140_v33, 0.0 }
 0x120   :  { %v144_v36 = vpop.f32.mrf.mxu3 }
 0x121   :  { %255 = vmatpush.xpose.msk.msrb.mxu2 %vm55_vm0, %v147_v35 }
 0x125   :  { %256 = vmatpush.xpose.msk.msrb.mxu2 %vm55_vm0, %v146_v37 }
 0x128   :  { %257 = vmatmul.msk.f32.vlgmr.msrb.gmra.mxu2 %vm55_vm0, %v149_v38 }
 0x1ab   :  { %v186_v41 = vpop.f32.mrf.mxu2 }
 0x1ac   :  { %v187_v42 = vadd.f32 %v186_v41, %v156_v40 }
 0x1ae   :  { %v258_v43 = vmul.f32 -1.442695, %v187_v42 }
 0x1b0   :  { %276 = vpow2.f32 %v258_v43 }
 0x1b6   :  { %v277_v44 = vpop.eup %276 }
 0x1b7   :  { %v192_v45 = vadd.f32 1.0, %v277_v44 }
 0x1b9   :  { %278 = vrcp.f32 %v192_v45  ;;  %v204_v49 = vand.u32 2147483648, %v192_v45  ;;  %v202_v51 = vand.u32 2147483647, %v192_v45  ;;  %vm198_vm3 = vweird.f32 %v192_v45 }
 0x1bb   :  { %v205_v53 = vor.u32 1.1754944e-38, %v204_v49  ;;  %vm203_vm6 = vcmp.eq.f32.partialorder %v202_v51, 8.507059e+37 }
 0x1bf   :  { %v279_v46 = vpop.eup %278 }
 0x1c0   :  { %v194_v47 = vmul.f32 %v279_v46, %v192_v45  ;;  %vm199_vm2 = vweird.f32 %v279_v46 }
 0x1c1   :  { %vm200_vm4 = vmor %vm198_vm3, %vm199_vm2 }
 0x1c2   :  { %v195_v48 = vsub.f32 1.0, %v194_v47 }
 0x1c4   :  { %v196_v50 = vmul.f32 %v279_v46, %v195_v48 }
 0x1c6   :  { %v197_v52 = vadd.f32 %v279_v46, %v196_v50 }
 0x1c8   :  { %v201_v54 = vsel %vm200_vm4, %v279_v46, %v197_v52 }
 0x1c9   :  { %v206_v55 = vsel %vm203_vm6, %v205_v53, %v201_v54 }
 0x1ca   :  { %209 = vst.msk [vmem:[#allocation3] sm:$0x1] %vm208_vm5, %v206_v55 }
 0x1cb   :  { %220 = dma.vmem_to_hbm [thread:$0]  %s216_s5, 16, %s218_s24, [#allocation4]  }
 0x1cc   :  { %304 = dma.done.wait [#allocation4], 16  }
 0x1cd   :  { %305 = vsyncadd [#allocation4], 4294967280 }
 0x1ce   :  { %225 = vsyncpa [#allocation4], 1 }

</bundles_post_ra>
